<compile_context>
chip_gen: v6e
topology: v6e:2x2x1
jax: 0.10.0
libtpu: 0.0.40
codegen_flags: <defaults>
</compile_context>

<pallas_src>
import jax
import jax.numpy as jnp
from jax.experimental import pallas as pl
from jax.experimental.pallas import tpu as pltpu


def _row_lse_kernel(w_ref, lse_ref):
    # w_ref : (N, N) f32 in VMEM
    # lse_ref: (N, 1) f32 -- lse_ref[i, 0] = logsumexp(w[i, :])
    w = w_ref[...]
    m = jnp.max(w, axis=1, keepdims=True)                 # (N, 1)
    s = jnp.sum(jnp.exp(w - m), axis=1, keepdims=True)    # (N, 1)
    lse_ref[...] = m + jnp.log(s)


def _gather_kernel(conds_ref, inputs_ref, wT_ref, lse_ref, out_ref):
    # conds_ref, inputs_ref : (1, TB) int32  -- batch on the lane axis
    # wT_ref                : (N, N) f32     -- wT[i, c] = w[c, i] (VMEM-resident)
    # lse_ref               : (N, 1) f32     -- hoisted per-row logsumexp of w
    # out_ref               : (1, TB) f32    -- lane-dense, single store per tile
    N = wT_ref.shape[0]
    TB = out_ref.shape[1]

    conds = conds_ref[...]                                        # (1, TB)
    inputs = inputs_ref[...]                                      # (1, TB)

    cls = jax.lax.broadcasted_iota(jnp.int32, (N, TB), 0)         # class index

    # One-hot over conds: P[i, b] = (i == conds[b]).
    P = (cls == conds).astype(jnp.float32)                        # (N, TB)

    # Row gather on the MXU: G[i, b] = sum_c wT[i, c] * P[c, b] = w[conds[b], i].
    G = jnp.dot(wT_ref[...], P, preferred_element_type=jnp.float32)  # (N, TB)

    # Column gather: val[b] = G[inputs[b], b] = w[conds[b], inputs[b]].
    sel = (cls == inputs).astype(jnp.float32)                     # (N, TB)
    val = jnp.sum(G * sel, axis=0, keepdims=True)                 # (1, TB)

    # Hoisted-lse gather: lse_g[b] = lse[conds[b]].
    lse_g = jnp.sum(lse_ref[...] * P, axis=0, keepdims=True)      # (1, TB)

    out_ref[...] = (val - lse_g).astype(out_ref.dtype)


def conditional_forward(inputs, conds, w, *, tile_b=128):
    """inputs, conds: (B, 1) int;  w: (N, N) float  ->  (B,) float32."""
    B = inputs.shape[0]
    N = w.shape[0]
    w32 = w.astype(jnp.float32)

    # ---- Kernel 1: hoisted per-row logsumexp of w (computed once, N values). ----
    lse = pl.pallas_call(
        _row_lse_kernel,
        out_shape=jax.ShapeDtypeStruct((N, 1), jnp.float32),
        grid=(1,),
        in_specs=[pl.BlockSpec((N, N), lambda i: (0, 0))],
        out_specs=pl.BlockSpec((N, 1), lambda i: (0, 0)),
    )(w32)

    # ---- Kernel 2: batched gather, TB elements per grid step. ----
    TB = tile_b                      # always 128+ lanes -> lane-dense output
    n_tiles = pl.cdiv(B, TB)
    B_pad = n_tiles * TB

    conds_v = jnp.zeros((1, B_pad), jnp.int32).at[0, :B].set(
        conds.reshape(-1).astype(jnp.int32))
    inputs_v = jnp.zeros((1, B_pad), jnp.int32).at[0, :B].set(
        inputs.reshape(-1).astype(jnp.int32))
    wT = jnp.swapaxes(w32, 0, 1)     # one-time layout transpose in the wrapper

    resident_bytes = 4 * N * N
    if resident_bytes > (8 << 20):
        # Large-N resident-w path: raise the scoped VMEM limit (clamped so it
        # still fits v7x's 64 MiB physical VMEM with pipeline headroom).
        compiler_params = pltpu.CompilerParams(
            dimension_semantics=("parallel",),
            vmem_limit_bytes=int(min(resident_bytes + (16 << 20), 48 << 20)))
    else:
        compiler_params = pltpu.CompilerParams(
            dimension_semantics=("parallel",))

    out = pl.pallas_call(
        _gather_kernel,
        out_shape=jax.ShapeDtypeStruct((1, B_pad), jnp.float32),
        grid=(n_tiles,),
        in_specs=[
            pl.BlockSpec((1, TB), lambda t: (0, t)),   # conds tile
            pl.BlockSpec((1, TB), lambda t: (0, t)),   # inputs tile
            pl.BlockSpec((N, N), lambda t: (0, 0)),    # wT, resident (DMA'd once)
            pl.BlockSpec((N, 1), lambda t: (0, 0)),    # row lse, resident
        ],
        out_specs=pl.BlockSpec((1, TB), lambda t: (0, t)),
        compiler_params=compiler_params,
    )(conds_v, inputs_v, wT, lse)

    return out[0, :B]


def reference_forward(inputs, conds, w):
    """Pure-JAX reference mirroring the PyTorch module."""
    conds_ = conds[:, 0]
    inputs_ = inputs[:, 0]
    rows = w[conds_]                                   # (B, N)
    cste = jax.scipy.special.logsumexp(rows, axis=1)   # (B,)
    return rows[jnp.arange(rows.shape[0]), inputs_] - cste


if __name__ == "__main__":
    N = 16   # categorical support size
    B = 8    # batch

    key = jax.random.PRNGKey(0)
    kw, kc, ki = jax.random.split(key, 3)

    # Parameter (the module inits zeros; use deterministic random values so the
    # logsumexp / gather path is non-trivial).
    w = jax.random.normal(kw, (N, N), dtype=jnp.float32)

    conds = jax.random.randint(kc, (B, 1), 0, N, dtype=jnp.int32)
    inputs = jax.random.randint(ki, (B, 1), 0, N, dtype=jnp.int32)

    out = conditional_forward(inputs, conds, w)
    out = jax.block_until_ready(out)

    ref = reference_forward(inputs, conds, w)
    assert out.shape == (B,)
    assert jnp.allclose(out, ref, atol=1e-5, rtol=1e-5), (out, ref)

    print("KERNEL_OK")
</pallas_src>

<mosaic_0001>
module attributes {stable_mosaic.version = 11 : i64} {
  func.func @_row_lse_kernel(%arg0: i32, %arg1: memref<16x16xf32, #tpu.memory_space<vmem>>, %arg2: memref<16x1xf32, #tpu.memory_space<vmem>>) attributes {dimension_semantics = [#tpu.dimension_semantics<arbitrary>], iteration_bounds = array<i64: 1>, scalar_prefetch = 0 : i64, scratch_operands = 0 : i64, tpu.core_type = #tpu.core_type<tc>, window_params = [{pipeline_mode = #tpu.pipeline_mode<synchronous>, transform_indices = @transform_0, window_bounds = array<i64: 16, 16>}, {pipeline_mode = #tpu.pipeline_mode<synchronous>, transform_indices = @transform_1, window_bounds = array<i64: 16, 1>}]} {
    %c0 = arith.constant 0 : index
    %c0_0 = arith.constant 0 : index
    %0 = vector.load %arg1[%c0, %c0_0] : memref<16x16xf32, #tpu.memory_space<vmem>>, vector<16x16xf32>
    %cst = arith.constant dense<0xFF800000> : vector<16xf32>
    %1 = vector.multi_reduction <maximumf>, %0, %cst [1] : vector<16x16xf32> to vector<16xf32>
    %2 = vector.shape_cast %1 : vector<16xf32> to vector<16x1xf32>
    %3 = vector.broadcast %2 : vector<16x1xf32> to vector<16x16xf32>
    %4 = arith.subf %0, %3 : vector<16x16xf32>
    %5 = math.exp %4 : vector<16x16xf32>
    %cst_1 = arith.constant dense<0.000000e+00> : vector<16xf32>
    %6 = vector.multi_reduction <add>, %5, %cst_1 [1] : vector<16x16xf32> to vector<16xf32>
    %7 = vector.shape_cast %6 : vector<16xf32> to vector<16x1xf32>
    %8 = math.log %7 : vector<16x1xf32>
    %9 = arith.addf %2, %8 : vector<16x1xf32>
    %c0_2 = arith.constant 0 : index
    %c0_3 = arith.constant 0 : index
    %10 = vector.load %arg2[%c0_2, %c0_3] : memref<16x1xf32, #tpu.memory_space<vmem>>, vector<16x1xf32>
    tpu.vector_store %arg2[%c0_2, %c0_3], %9 {strides = array<i32>} : memref<16x1xf32, #tpu.memory_space<vmem>>, vector<16x1xf32>,
    return
  }
  func.func @transform_0(%arg0: i32) -> (i32, i32) {
    %c0_i32 = arith.constant 0 : i32
    %c0_i32_0 = arith.constant 0 : i32
    %c0_i32_1 = arith.constant 0 : i32
    return %c0_i32, %c0_i32_0 : i32, i32
  }
  func.func @transform_1(%arg0: i32) -> (i32, i32) {
    %c0_i32 = arith.constant 0 : i32
    %c0_i32_0 = arith.constant 0 : i32
    %c0_i32_1 = arith.constant 0 : i32
    return %c0_i32, %c0_i32_0 : i32, i32
  }
}

</mosaic_0001>

<bundles_post_ra>
// kernel: tpu_custom_call.1
= control target key start
LH: loop header
LB: loop body
LE: loop exit
PB: predicated region body
PF: predicated region fallthrough
CT: control target
= control target key end

     0   :  { %6 = vsyncpa [#allocation3], 0  ;;  %s90_s6 = smov [#allocation2]   ;;  %s116_s0 = inlined_call_operand.hbm [shape: f32[16,16], index: 0, kind: input, shape index: {}]   ;;  %s117_s1 = inlined_call_operand.vmem [shape: f32[16,1], index: 1, kind: output, shape index: {}]  }
   0x1   :  { %s12_s7 = sshll.u32 %s90_s6, 4  ;;  %s13_s7 = int_to_ptr.vmem [resolvable:$true] %s12_s7 }
   0x2   :  { %s76_s8 = scalar_lea.vmem %s13_s7, 256  ;;  %p81_p1 = scmp.lt.s32.totalorder %s13_s7, %s13_s7 }
   0x3   :  { %p77_p0 = scmp.ne.s32.totalorder %s13_s7, %s76_s8  ;;  %p82_p2 = scmp.lt.s32.totalorder %s76_s8, %s76_s8 }
   0x5   :  { %p83_p3 = por %p82_p2, %p81_p1 }
   0x7   :  { %p84_p4 = pnand %p83_p3, %p77_p0 }
   0x9   :  { %87 = shalt.err (!%p84_p4)
}
   0xa   :  { %s91_s9 = smov 128   ;;  %s92_s10 = smov 8  }
   0xb   :  { %18 = dma.hbm_to_vmem [thread:$0]  %s116_s0, 256, %s13_s7, [#allocation3], %s91_s9, %s91_s9, %s92_s10  }
   0xc   :  { %88 = dma.done.wait [#allocation3], 256  }
   0xd   :  { %89 = vsyncadd [#allocation3], 4294967040  ;;  %vm24_vm0 = vcmask 130048   ;;  %v22_v0 = vld [vmem:[#allocation2] sm:$0xff]  ;;  %v23_v1 = vld [vmem:[#allocation2 + $0x8] sm:$0xff]  ;;  %vm49_vm1 = vcmask 7168  }
   0xe   :  { %v25_v2 = vsel %vm24_vm0, %v22_v0, -inf  ;;  %v28_v3 = vsel %vm24_vm0, %v23_v1, -inf }
   0xf   :  { %26 = vmax.xlane.f32.xlu0 %v25_v2 }
  0x13   :  { %29 = vmax.xlane.f32.xlu0 %v28_v3 }
  0x98   :  { %v27_v4 = vpop.xlane.xlu0 %26 }
  0x99   :  { %v31_v5 = vsub.f32 %v22_v0, %v27_v4 }
  0x9b   :  { %v33_v6 = vmul.f32 1.442695, %v31_v5 }
  0x9c   :  { %v30_v7 = vpop.xlane.xlu0 %29 }
  0x9d   :  { %60 = vpow2.f32 %v33_v6  ;;  %v32_v8 = vsub.f32 %v23_v1, %v30_v7 }
  0x9f   :  { %v35_v9 = vmul.f32 1.442695, %v32_v8 }
  0xa1   :  { %62 = vpow2.f32 %v35_v9 }
  0xaa   :  { %v61_v10 = vpop.eup %60 }
  0xab   :  { %v37_v11 = vsel %vm24_vm0, %v61_v10, 0.0 }
  0xac   :  { %38 = vadd.xlane.f32.xlu1 %v37_v11 }
  0xae   :  { %v63_v12 = vpop.eup %62 }
  0xaf   :  { %v40_v13 = vsel %vm24_vm0, %v63_v12, 0.0 }
  0xb0   :  { %41 = vadd.xlane.f32.xlu1 %v40_v13 }
 0x135   :  { %v39_v14 = vpop.xlane.xlu1 %38 }
 0x136   :  { %64 = vlog2.f32 %v39_v14 }
 0x139   :  { %v42_v15 = vpop.xlane.xlu1 %41 }
 0x13a   :  { %66 = vlog2.f32 %v42_v15 }
 0x143   :  { %v65_v16 = vpop.eup %64 }
 0x144   :  { %v44_v17 = vmul.f32 0.6931472, %v65_v16 }
 0x146   :  { %v47_v18 = vadd.f32 %v44_v17, %v27_v4 }
 0x147   :  { %v67_v19 = vpop.eup %66 }
 0x148   :  { %50 = vst.msk [vmem:[%s117_s1] sm:$0xff] %vm49_vm1, %v47_v18  ;;  %v46_v20 = vmul.f32 0.6931472, %v67_v19 }
 0x14a   :  { %v48_v21 = vadd.f32 %v46_v20, %v30_v7 }
 0x14c   :  { %51 = vst.msk [vmem:[%s117_s1 + $0x8] sm:$0xff] %vm49_vm1, %v48_v21 }
 0x14d   :  { %56 = vsyncpa [#allocation3], 1 }

</bundles_post_ra>
